<compile_context>
chip_gen: v6e
topology: v6e:2x2x1
jax: 0.10.0
libtpu: 0.0.40
codegen_flags: <defaults>
</compile_context>

<pallas_src>
import functools

import jax
import jax.numpy as jnp
from jax.experimental import pallas as pl
from jax.experimental.pallas import tpu as pltpu


def _decomp_kernel(x_ref, res_ref, mean_ref, xpad_ref, *, kernel_size, pad):
    """One (batch, channel-tile) block: res/mean over the full time axis."""
    k = kernel_size
    L = x_ref.shape[1]
    TC = x_ref.shape[2]

    # Single upcast to f32 (accumulation dtype), matching PyTorch float math.
    xf = x_ref[...].astype(jnp.float32)                 # (1, L, TC)

    # Zero-padded copy in VMEM scratch — no HBM traffic for the padding.
    if pad > 0:
        zeros_pad = jnp.zeros((1, pad, TC), jnp.float32)
        xpad_ref[:, :pad, :] = zeros_pad
        xpad_ref[:, pad + L:, :] = zeros_pad
    xpad_ref[:, pad:pad + L, :] = xf
    xp = xpad_ref[...]                                  # (1, L + 2*pad, TC)

    # Sliding-window sum of width k along time, via binary decomposition of k:
    # O(log k) adds instead of k unaligned slice+adds. All offsets are static
    # Python ints (the loop below unrolls at trace time).
    acc = None
    cur = xp                      # partial sums of current `width`
    avail = L + 2 * pad           # number of valid window starts for `width`
    width = 1
    covered = 0                   # how much of the k-window is already summed
    rem = k
    while rem > 0:
        if rem & 1:
            seg = cur[:, covered:covered + L, :]
            acc = seg if acc is None else acc + seg
            covered += width
        rem >>= 1
        if rem > 0:
            new_avail = avail - width
            cur = cur[:, :new_avail, :] + cur[:, width:width + new_avail, :]
            avail = new_avail
            width *= 2

    # count_include_pad=True -> always divide by kernel_size.
    mean = acc * (1.0 / k)
    mean_ref[...] = mean.astype(mean_ref.dtype)
    res_ref[...] = (xf - mean).astype(res_ref.dtype)


def _vmem_estimate(L, pad, tc, itemsize):
    Lp = L + 2 * pad
    # double-buffered input + two double-buffered outputs + f32 scratch
    # + a few f32 temporaries for the window-sum tree.
    return (2 * L * tc + 4 * L * tc) * itemsize + Lp * tc * 4 + 4 * L * tc * 4


def _pick_c_tile(C, L, pad, itemsize):
    """Largest lane tile (multiple of 128 dividing C) whose working set fits a
    conservative VMEM budget; fall back to the full channel dim otherwise."""
    if C % 128 != 0:
        return C                          # full-dim block (small-C models)
    budget = 16 * 1024 * 1024
    for tc in (1024, 512, 256, 128):
        if C % tc:
            continue
        if _vmem_estimate(L, pad, tc, itemsize) <= budget:
            return tc
    return 128


def series_decomp(x, kernel_size):
    """x: (B, L, C). Returns (res, moving_mean), both (B, L, C)."""
    if kernel_size % 2 == 0:
        # Even k changes the output length in PyTorch (res = x - mean would
        # not be shape-consistent); the module is used with odd kernel sizes.
        raise ValueError("series_decomp requires an odd kernel_size")
    B, L, C = x.shape
    pad = (kernel_size - 1) // 2
    Lp = L + 2 * pad

    itemsize = jnp.dtype(x.dtype).itemsize
    TC = _pick_c_tile(C, L, pad, itemsize)
    n_ct = C // TC

    est = _vmem_estimate(L, pad, TC, itemsize)
    vmem_limit = int(min(max(2 * est, 32 << 20), 48 << 20))  # headroom, v7x-safe

    kernel = functools.partial(_decomp_kernel, kernel_size=kernel_size, pad=pad)

    res, mean = pl.pallas_call(
        kernel,
        out_shape=(
            jax.ShapeDtypeStruct((B, L, C), x.dtype),
            jax.ShapeDtypeStruct((B, L, C), x.dtype),
        ),
        grid=(B, n_ct),
        in_specs=[
            pl.BlockSpec((1, L, TC), lambda b, c: (b, 0, c)),
        ],
        out_specs=(
            pl.BlockSpec((1, L, TC), lambda b, c: (b, 0, c)),
            pl.BlockSpec((1, L, TC), lambda b, c: (b, 0, c)),
        ),
        scratch_shapes=[pltpu.VMEM((1, Lp, TC), jnp.float32)],
        compiler_params=pltpu.CompilerParams(
            dimension_semantics=("parallel", "parallel"),
            vmem_limit_bytes=vmem_limit,
        ),
    )(x)
    return res, mean
    # TODO(synk): for very small C (<128) a lane-dense (L, B*C) layout would
    # avoid masked stores, but the required wrapper transposes cost more HBM
    # traffic than they save for this memory-bound op, so it is not done here.


def _reference(x, kernel_size):
    # Pure-JAX reference of the PyTorch forward (zero pad, divide by k).
    pad = (kernel_size - 1) // 2
    x_pad = jnp.pad(x, ((0, 0), (pad, pad), (0, 0)))
    L = x.shape[1]
    mean = sum(x_pad[:, j:j + L, :] for j in range(kernel_size)) / kernel_size
    return x - mean, mean


if __name__ == "__main__":
    kernel_size = 5
    B, L, C = 2, 16, 8

    key = jax.random.PRNGKey(0)
    x = jax.random.normal(key, (B, L, C), dtype=jnp.float32)

    res, mean = series_decomp(x, kernel_size)
    res = jax.block_until_ready(res)
    mean = jax.block_until_ready(mean)

    res_ref, mean_ref = _reference(x, kernel_size)
    assert jnp.allclose(res, res_ref, atol=1e-5, rtol=1e-5)
    assert jnp.allclose(mean, mean_ref, atol=1e-5, rtol=1e-5)

    print("KERNEL_OK")
</pallas_src>

<mosaic_0001>
module attributes {stable_mosaic.version = 11 : i64} {
  func.func @_decomp_kernel(%arg0: i32, %arg1: i32, %arg2: memref<1x16x8xf32, #tpu.memory_space<vmem>>, %arg3: memref<1x16x8xf32, #tpu.memory_space<vmem>>, %arg4: memref<1x16x8xf32, #tpu.memory_space<vmem>>, %arg5: memref<1x20x8xf32, #tpu.memory_space<vmem>>) attributes {dimension_semantics = [#tpu.dimension_semantics<parallel>, #tpu.dimension_semantics<parallel>], iteration_bounds = array<i64: 2, 1>, scalar_prefetch = 0 : i64, scratch_operands = 1 : i64, tpu.core_type = #tpu.core_type<tc>, window_params = [{transform_indices = @transform_0, window_bounds = array<i64: 1, 16, 8>}, {transform_indices = @transform_1, window_bounds = array<i64: 1, 16, 8>}, {transform_indices = @transform_2, window_bounds = array<i64: 1, 16, 8>}]} {
    %c0 = arith.constant 0 : index
    %c0_0 = arith.constant 0 : index
    %c0_1 = arith.constant 0 : index
    %0 = vector.load %arg2[%c0, %c0_0, %c0_1] : memref<1x16x8xf32, #tpu.memory_space<vmem>>, vector<1x16x8xf32>
    %cst = arith.constant 0.000000e+00 : f32
    %1 = vector.broadcast %cst : f32 to vector<1x2x8xf32>
    %c0_2 = arith.constant 0 : index
    %c0_3 = arith.constant 0 : index
    %c0_4 = arith.constant 0 : index
    %2 = vector.load %arg5[%c0_2, %c0_3, %c0_4] : memref<1x20x8xf32, #tpu.memory_space<vmem>>, vector<1x2x8xf32>
    tpu.vector_store %arg5[%c0_2, %c0_3, %c0_4], %1 {strides = array<i32>} : memref<1x20x8xf32, #tpu.memory_space<vmem>>, vector<1x2x8xf32>,
    %c0_5 = arith.constant 0 : index
    %c18 = arith.constant 18 : index
    %c0_6 = arith.constant 0 : index
    %3 = vector.load %arg5[%c0_5, %c18, %c0_6] : memref<1x20x8xf32, #tpu.memory_space<vmem>>, vector<1x2x8xf32>
    tpu.vector_store %arg5[%c0_5, %c18, %c0_6], %1 {strides = array<i32>} : memref<1x20x8xf32, #tpu.memory_space<vmem>>, vector<1x2x8xf32>,
    %c0_7 = arith.constant 0 : index
    %c2 = arith.constant 2 : index
    %c0_8 = arith.constant 0 : index
    %4 = vector.load %arg5[%c0_7, %c2, %c0_8] : memref<1x20x8xf32, #tpu.memory_space<vmem>>, vector<1x16x8xf32>
    tpu.vector_store %arg5[%c0_7, %c2, %c0_8], %0 {strides = array<i32>} : memref<1x20x8xf32, #tpu.memory_space<vmem>>, vector<1x16x8xf32>,
    %c0_9 = arith.constant 0 : index
    %c0_10 = arith.constant 0 : index
    %c0_11 = arith.constant 0 : index
    %5 = vector.load %arg5[%c0_9, %c0_10, %c0_11] : memref<1x20x8xf32, #tpu.memory_space<vmem>>, vector<1x20x8xf32>
    %6 = vector.extract_strided_slice %5 {offsets = [0, 0, 0], sizes = [1, 16, 8], strides = [1, 1, 1]} : vector<1x20x8xf32> to vector<1x16x8xf32>
    %7 = vector.extract_strided_slice %5 {offsets = [0, 0, 0], sizes = [1, 19, 8], strides = [1, 1, 1]} : vector<1x20x8xf32> to vector<1x19x8xf32>
    %8 = vector.extract_strided_slice %5 {offsets = [0, 1, 0], sizes = [1, 19, 8], strides = [1, 1, 1]} : vector<1x20x8xf32> to vector<1x19x8xf32>
    %9 = arith.addf %7, %8 : vector<1x19x8xf32>
    %10 = vector.extract_strided_slice %9 {offsets = [0, 0, 0], sizes = [1, 17, 8], strides = [1, 1, 1]} : vector<1x19x8xf32> to vector<1x17x8xf32>
    %11 = vector.extract_strided_slice %9 {offsets = [0, 2, 0], sizes = [1, 17, 8], strides = [1, 1, 1]} : vector<1x19x8xf32> to vector<1x17x8xf32>
    %12 = arith.addf %10, %11 : vector<1x17x8xf32>
    %13 = vector.extract_strided_slice %12 {offsets = [0, 1, 0], sizes = [1, 16, 8], strides = [1, 1, 1]} : vector<1x17x8xf32> to vector<1x16x8xf32>
    %14 = arith.addf %6, %13 : vector<1x16x8xf32>
    %cst_12 = arith.constant 2.000000e-01 : f32
    %15 = vector.broadcast %cst_12 : f32 to vector<1x16x8xf32>
    %16 = arith.mulf %14, %15 : vector<1x16x8xf32>
    %c0_13 = arith.constant 0 : index
    %c0_14 = arith.constant 0 : index
    %c0_15 = arith.constant 0 : index
    %17 = vector.load %arg4[%c0_13, %c0_14, %c0_15] : memref<1x16x8xf32, #tpu.memory_space<vmem>>, vector<1x16x8xf32>
    tpu.vector_store %arg4[%c0_13, %c0_14, %c0_15], %16 {strides = array<i32>} : memref<1x16x8xf32, #tpu.memory_space<vmem>>, vector<1x16x8xf32>,
    %18 = arith.subf %0, %16 : vector<1x16x8xf32>
    %c0_16 = arith.constant 0 : index
    %c0_17 = arith.constant 0 : index
    %c0_18 = arith.constant 0 : index
    %19 = vector.load %arg3[%c0_16, %c0_17, %c0_18] : memref<1x16x8xf32, #tpu.memory_space<vmem>>, vector<1x16x8xf32>
    tpu.vector_store %arg3[%c0_16, %c0_17, %c0_18], %18 {strides = array<i32>} : memref<1x16x8xf32, #tpu.memory_space<vmem>>, vector<1x16x8xf32>,
    return
  }
  func.func @transform_0(%arg0: i32, %arg1: i32) -> (i32, i32, i32) {
    %c0_i32 = arith.constant 0 : i32
    %c0_i32_0 = arith.constant 0 : i32
    return %arg0, %c0_i32, %arg1 : i32, i32, i32
  }
  func.func @transform_1(%arg0: i32, %arg1: i32) -> (i32, i32, i32) {
    %c0_i32 = arith.constant 0 : i32
    %c0_i32_0 = arith.constant 0 : i32
    return %arg0, %c0_i32, %arg1 : i32, i32, i32
  }
  func.func @transform_2(%arg0: i32, %arg1: i32) -> (i32, i32, i32) {
    %c0_i32 = arith.constant 0 : i32
    %c0_i32_0 = arith.constant 0 : i32
    return %arg0, %c0_i32, %arg1 : i32, i32, i32
  }
}

</mosaic_0001>

<bundles_post_ra>
// kernel: tpu_custom_call.1
= control target key start
LH: loop header
LB: loop body
LE: loop exit
PB: predicated region body
PF: predicated region fallthrough
CT: control target
= control target key end

     0   :  { %s468_s9 = smov 0   ;;  %s470_s10 = smov 0   ;;  %s519_s0 = inlined_call_operand.vmem [shape: f32[2,16,8], index: 0, kind: input, shape index: {}]   ;;  %s520_s1 = inlined_call_operand.vmem [shape: f32[2,16,8], index: 1, kind: output, shape index: {0}]   ;;  %s521_s2 = inlined_call_operand.vmem [shape: f32[2,16,8], index: 2, kind: output, shape index: {1}]  }
   0x1   :  { %s472_s11 = smov 0  }
   0x2 LB: > { %s25_s12 = sadd.s32 1, %s446_s10  ;;  %p391_p0 = scmp.ge.s32.totalorder %s450_s11, 1  ;;  %s450_s11 = sphi %s472_s11, %s13_s11   ;;  %s446_s10 = sphi %s470_s10, %s523_s10   ;;  %s442_s9 = sphi %s468_s9, %s522_s9  }
   0x3   : > { %p27_p1 = scmp.ge.s32.totalorder %s25_s12, 2  ;;  %p136_p2 = scmp.lt.s32.totalorder %s450_s11, 3 }
   0x5   : > { %s525_s12 = smov (%p27_p1, %s25_s12), 0  ;;  %p137_p3 = pnand %p391_p0, %p136_p2 }
   0x6   : > { %p172_p4 = scmp.lt.s32.totalorder (!%p137_p3), %s442_s9, 1 }
   0x7   : > { %140 = sbr.rel (%p137_p3) target bundleno = 44 (0x2c), region = 24 }
   0xc   : > { %vm198_vm0 = vcmask 58368   ;;  %v452_v0 = vmov 0.0   ;;  %s527_s9 = smov (!%p172_p4, %s442_s9), 1  ;;  %vm201_vm1 = vcmask 64512   ;;  %vm210_vm2 = vcmask 1046528  }
   0xd   : > { %199 = vst.msk [vmem:[#allocation2] sm:$0x3] %vm198_vm0, %v452_v0  ;;  %200 = vst.msk [vmem:[#allocation2 + $0x12] sm:$0x3] %vm198_vm0, %v452_v0  ;;  %s486_s13 = sshll.u32 %s527_s9, 4  ;;  %vm225_vm3 = vcmask 1045504  }
   0xe   : > { %s179_s16 = scalar_lea.vmem %s519_s0, %s486_s13  ;;  %s195_s19 = scalar_lea.vmem %s521_s2, %s486_s13 }
   0xf   : > { %v196_v1 = vld [vmem:[%s179_s16] sm:$0xff]  ;;  %v197_v2 = vld [vmem:[%s179_s16 + $0x8] sm:$0xff]  ;;  %s187_s22 = scalar_lea.vmem %s520_s1, %s486_s13 }
  0x10   : > { %202 = vst.msk [vmem:[#allocation2 + $0x2] sm:$0xff] %vm201_vm1, %v196_v1  ;;  %203 = vst.msk [vmem:[#allocation2 + $0xa] sm:$0xff] %vm201_vm1, %v197_v2 }
  0x17   : > { %v205_v3 = vld [vmem:[#allocation2 + $0x8] sm:$0xff]  ;;  %v206_v4 = vld [vmem:[#allocation2 + $0x10] sm:$0xf]  ;;  %v204_v5 = vld [vmem:[#allocation2] sm:$0xff] }
  0x18   : > { %v212_v6 = vrot.slane %v205_v3, 1  ;;  %v214_v7 = vrot.slane %v206_v4, 1  ;;  %v211_v8 = vrot.slane %v204_v5, 1 }
  0x1a   : > { %v215_v9 = vsel %vm210_vm2, %v212_v6, %v214_v7  ;;  %v221_v10 = vadd.f32 %v214_v7, %v206_v4  ;;  %v213_v11 = vsel %vm210_vm2, %v211_v8, %v212_v6 }
  0x1b   : > { %v220_v12 = vadd.f32 %v215_v9, %v205_v3  ;;  %v219_v13 = vadd.f32 %v213_v11, %v204_v5 }
  0x1c   : > { %v229_v14 = vrot.slane %v221_v10, 2 }
  0x1d   : > { %v227_v15 = vrot.slane %v220_v12, 2  ;;  %v226_v16 = vrot.slane %v219_v13, 2 }
  0x1e   : > { %v236_v17 = vadd.f32 %v229_v14, %v221_v10 }
  0x1f   : > { %v230_v18 = vsel %vm225_vm3, %v227_v15, %v229_v14  ;;  %v228_v19 = vsel %vm225_vm3, %v226_v16, %v227_v15 }
  0x20   : > { %v235_v20 = vadd.f32 %v230_v18, %v220_v12  ;;  %v234_v21 = vadd.f32 %v228_v19, %v219_v13  ;;  %v243_v23 = vrot.slane %v236_v17, 1 }
  0x22   : > { %v241_v22 = vrot.slane %v235_v20, 1  ;;  %v240_v24 = vrot.slane %v234_v21, 1 }
  0x24   : > { %v244_v25 = vsel %vm210_vm2, %v241_v22, %v243_v23  ;;  %v242_v26 = vsel %vm210_vm2, %v240_v24, %v241_v22 }
  0x25   : > { %v248_v27 = vadd.f32 %v244_v25, %v205_v3  ;;  %v247_v28 = vadd.f32 %v242_v26, %v204_v5 }
  0x27   : > { %v250_v29 = vmul.f32 0.2, %v248_v27  ;;  %v249_v30 = vmul.f32 0.2, %v247_v28 }
  0x29   : > { %v254_v31 = vsub.f32 %v197_v2, %v250_v29  ;;  %251 = vst.msk [vmem:[%s195_s19] sm:$0xff] %vm201_vm1, %v249_v30  ;;  %252 = vst.msk [vmem:[%s195_s19 + $0x8] sm:$0xff] %vm201_vm1, %v250_v29  ;;  %v253_v32 = vsub.f32 %v196_v1, %v249_v30 }
  0x2b   : > { %255 = vst.msk [vmem:[%s187_s22] sm:$0xff] %vm201_vm1, %v253_v32  ;;  %256 = vst.msk [vmem:[%s187_s22 + $0x8] sm:$0xff] %vm201_vm1, %v254_v31 }
  0x2c PF: > { %s13_s11 = sadd.s32 1, %s450_s11   ;;  %s522_s9 = smov %s446_s10 }
  0x2d   : > { %p10_p5 = scmp.ge.s32.totalorder %s13_s11, 4   ;;  %s523_s10 = smov %s525_s12 }
  0x2f   :  { %12 = sbr.rel (!%p10_p5) target bundleno = 2 (0x2), region = 66 }

</bundles_post_ra>
